<compile_context>
chip_gen: v7x
topology: tpu7x:2x2x1
jax: 0.10.0
libtpu: 0.0.40
codegen_flags: <defaults>
</compile_context>

<pallas_src>
import functools
import math
from typing import NamedTuple

import jax
import jax.numpy as jnp
from jax.experimental import pallas as pl
from jax.experimental.pallas import tpu as pltpu

EPS = 1e-5
LAYER_CFG = [(64, 3, 1), (128, 4, 2), (256, 6, 1), (512, 3, 1)]

# Stay under v7x's 64 MiB/TensorCore while comfortably above the 16/32 MiB
# default scoped limits of v5e/v6e.
VMEM_LIMIT = 48 * 1024 * 1024


# ----------------------------------------------------------------------------
# Small helpers
# ----------------------------------------------------------------------------
def _round_up(x, m):
    return (x + m - 1) // m * m


def _pad_rows(m):
    """Padded row count used for every matmul M dimension (deterministic, so a
    deferred conv output can be fed straight into the next 1x1 matmul)."""
    return _round_up(m, 16) if m <= 256 else _round_up(m, 256)


def _pick_tile(dim, cap, quantum=128):
    """Largest multiple of `quantum` that divides `dim` and is <= cap."""
    best = min(quantum, dim)
    t = quantum
    lim = min(cap, dim)
    while t <= lim:
        if dim % t == 0:
            best = t
        t += quantum
    return best


def _row_tile(mp, np_, cap_bytes=4 * 1024 * 1024):
    """Row tile for the mem-bound elementwise kernels: as big as fits the VMEM
    budget while keeping >=2 grid steps (feeds both v7x TensorCores)."""
    max_rows = max(16, cap_bytes // max(np_ * 4, 1))
    best = None
    t = 16
    while t <= mp:
        if mp % t == 0 and t <= max_rows and mp // t >= 2:
            best = t
        t += 16
    if best is None:
        best = mp
    return best


# ----------------------------------------------------------------------------
# Pallas kernels
# ----------------------------------------------------------------------------
def _matmul_stats_kernel(*refs, fuse_a_bn, m_valid, tm):
    """bf16 x bf16 -> f32 accumulate; optional fused BN+ReLU prologue on the A
    tile; epilogue writes bf16 tile + per-column sum / sum-of-squares."""
    if fuse_a_bn:
        a_ref, asc_ref, ash_ref, b_ref, o_ref, s_ref, q_ref, acc_ref = refs
    else:
        a_ref, b_ref, o_ref, s_ref, q_ref, acc_ref = refs

    k = pl.program_id(2)

    @pl.when(k == 0)
    def _():
        acc_ref[...] = jnp.zeros_like(acc_ref)

    a = a_ref[...]
    if fuse_a_bn:
        # Previous conv's BatchNorm + ReLU applied on the fly (VPU work rides
        # under the MXU / DMA slack).
        af = jnp.maximum(a.astype(jnp.float32) * asc_ref[...] + ash_ref[...], 0.0)
        if m_valid is not None:
            # Keep zero-padded rows at zero so they don't pollute the fused
            # column statistics of *this* conv.
            rows = (pl.program_id(0) * tm
                    + jax.lax.broadcasted_iota(jnp.int32, af.shape, 0))
            af = jnp.where(rows < m_valid, af, 0.0)
        a = af.astype(jnp.bfloat16)

    acc_ref[...] += jnp.dot(a, b_ref[...], preferred_element_type=jnp.float32)

    @pl.when(k == pl.num_programs(2) - 1)
    def _():
        acc = acc_ref[...]
        o_ref[...] = acc.astype(o_ref.dtype)
        s = jnp.sum(acc, axis=0, keepdims=True)            # (1, tn)
        q = jnp.sum(acc * acc, axis=0, keepdims=True)      # (1, tn)
        # Broadcast across 8 sublanes so the store is a full (8,128)-tile write.
        s_ref[...] = jnp.broadcast_to(s, s_ref.shape)
        q_ref[...] = jnp.broadcast_to(q, q_ref.shape)


def matmul_stats_pallas(a, b, a_scale=None, a_shift=None, m_valid=None):
    """(Mp,Kp)@(Kp,Np) in bf16 with fused column statistics.

    `a` and `b` are already padded (rows/cols multiples of 16/128, zero pad).
    If a_scale/a_shift are given, the previous layer's BN+ReLU is applied to
    the A tiles inside the kernel prologue.  Returns
    (y bf16 (Mp,Np), col_sum partials (gi,8,Np) f32, col_sq partials)."""
    mp, kp = a.shape
    kp2, npad = b.shape
    assert kp == kp2, (a.shape, b.shape)

    tm = mp if mp <= 256 else 256
    tk = _pick_tile(kp, 2560)          # big K tiles: fewer weight-stream steps
    tn = _pick_tile(npad, 512)
    gi = mp // tm
    gj = npad // tn
    # v7x shards "parallel" grid axes over its 2 TensorCores: keep >=2 parallel
    # tiles whenever it is cheap (split N first, else split M).
    if gi * gj < 2 and npad % 256 == 0:
        tn = npad // 2
        gj = 2
    if gi * gj < 2 and tm == mp and mp % 32 == 0:
        tm = mp // 2
        gi = 2
    gk = kp // tk

    fused = a_scale is not None
    kern = functools.partial(_matmul_stats_kernel, fuse_a_bn=fused,
                             m_valid=m_valid, tm=tm)

    in_specs = [pl.BlockSpec((tm, tk), lambda i, j, k: (i, k))]
    inputs = [a]
    if fused:
        in_specs += [pl.BlockSpec((1, tk), lambda i, j, k: (0, k)),
                     pl.BlockSpec((1, tk), lambda i, j, k: (0, k))]
        inputs += [a_scale, a_shift]
    in_specs.append(pl.BlockSpec((tk, tn), lambda i, j, k: (k, j)))
    inputs.append(b)

    cost = pl.CostEstimate(
        flops=2 * mp * npad * kp,
        transcendentals=0,
        bytes_accessed=(mp * kp + kp * npad + mp * npad) * 2 + 2 * gi * 8 * npad * 4)

    return pl.pallas_call(
        kern,
        out_shape=(jax.ShapeDtypeStruct((mp, npad), jnp.bfloat16),
                   jax.ShapeDtypeStruct((gi, 8, npad), jnp.float32),
                   jax.ShapeDtypeStruct((gi, 8, npad), jnp.float32)),
        grid=(gi, gj, gk),
        in_specs=in_specs,
        out_specs=(pl.BlockSpec((tm, tn), lambda i, j, k: (i, j)),
                   pl.BlockSpec((1, 8, tn), lambda i, j, k: (i, 0, j)),
                   pl.BlockSpec((1, 8, tn), lambda i, j, k: (i, 0, j))),
        scratch_shapes=[pltpu.VMEM((tm, tn), jnp.float32)],
        compiler_params=pltpu.CompilerParams(
            dimension_semantics=("parallel", "parallel", "arbitrary"),
            vmem_limit_bytes=VMEM_LIMIT),
        cost_estimate=cost,
    )(*inputs)


def _bn_act_kernel(x_ref, s_ref, b_ref, o_ref, *, relu):
    y = x_ref[...].astype(jnp.float32) * s_ref[...] + b_ref[...]
    if relu:
        y = jnp.maximum(y, 0.0)
    o_ref[...] = y.astype(o_ref.dtype)


def bn_act_pallas(x, scale, shift, relu):
    mp, npad = x.shape
    tm = _row_tile(mp, npad)
    kern = functools.partial(_bn_act_kernel, relu=relu)
    return pl.pallas_call(
        kern,
        out_shape=jax.ShapeDtypeStruct((mp, npad), jnp.bfloat16),
        grid=(mp // tm,),
        in_specs=[pl.BlockSpec((tm, npad), lambda i: (i, 0)),
                  pl.BlockSpec((1, npad), lambda i: (0, 0)),
                  pl.BlockSpec((1, npad), lambda i: (0, 0))],
        out_specs=pl.BlockSpec((tm, npad), lambda i: (i, 0)),
        compiler_params=pltpu.CompilerParams(
            dimension_semantics=("parallel",),
            vmem_limit_bytes=VMEM_LIMIT),
    )(x, scale, shift)


def _bn_add_relu_kernel(x_ref, r_ref, s_ref, b_ref, o_ref):
    y = (x_ref[...].astype(jnp.float32) * s_ref[...] + b_ref[...]
         + r_ref[...].astype(jnp.float32))
    o_ref[...] = jnp.maximum(y, 0.0).astype(o_ref.dtype)


def bn_add_relu_pallas(x, res, scale, shift):
    mp, npad = x.shape
    tm = _row_tile(mp, npad)
    return pl.pallas_call(
        _bn_add_relu_kernel,
        out_shape=jax.ShapeDtypeStruct((mp, npad), jnp.bfloat16),
        grid=(mp // tm,),
        in_specs=[pl.BlockSpec((tm, npad), lambda i: (i, 0)),
                  pl.BlockSpec((tm, npad), lambda i: (i, 0)),
                  pl.BlockSpec((1, npad), lambda i: (0, 0)),
                  pl.BlockSpec((1, npad), lambda i: (0, 0))],
        out_specs=pl.BlockSpec((tm, npad), lambda i: (i, 0)),
        compiler_params=pltpu.CompilerParams(
            dimension_semantics=("parallel",),
            vmem_limit_bytes=VMEM_LIMIT),
    )(x, res, scale, shift)


# ----------------------------------------------------------------------------
# Convolution + BatchNorm (+ ReLU / residual) built from the kernels above
# ----------------------------------------------------------------------------
def im2col(x, kh, kw, stride, pad):
    """x: (N,H,W,C) -> bf16 patches (N*Ho*Wo, kh*kw*C), plus output dims."""
    N, H, W, C = x.shape
    xb = x.astype(jnp.bfloat16)
    if kh == 1 and kw == 1 and stride == 1 and pad == 0:
        return xb.reshape(N * H * W, C), (N, H, W)        # zero-copy fast path
    xp = jnp.pad(xb, ((0, 0), (pad, pad), (pad, pad), (0, 0)))
    Ho = (H + 2 * pad - kh) // stride + 1
    Wo = (W + 2 * pad - kw) // stride + 1
    cols = []
    for i in range(kh):
        for j in range(kw):
            cols.append(xp[:, i:i + stride * (Ho - 1) + 1:stride,
                           j:j + stride * (Wo - 1) + 1:stride, :])
    patches = jnp.concatenate(cols, axis=-1)              # (N, Ho, Wo, kh*kw*C)
    return patches.reshape(N * Ho * Wo, kh * kw * C), (N, Ho, Wo)


def _bn_coeffs(sp, qp, M):
    """BatchNorm (training-mode) scale/shift from fused column statistics."""
    col_sum = sp[:, 0, :].sum(axis=0, keepdims=True)       # (1, Np) f32
    col_sq = qp[:, 0, :].sum(axis=0, keepdims=True)
    mean = col_sum / M
    var = jnp.maximum(col_sq / M - mean * mean, 0.0)        # clamp cancellation
    scale = jax.lax.rsqrt(var + EPS)                        # gamma = 1
    shift = -mean * scale                                   # beta = 0
    return scale, shift


def _finish(y, scale, shift, residual, *, M, O, n, ho, wo, relu):
    mp, npad = y.shape
    if residual is None:
        out = bn_act_pallas(y, scale, shift, relu)
    else:
        # Standard bottleneck tail: BN -> +identity -> ReLU.
        assert relu, "residual path always applies ReLU (bottleneck tail)"
        r = residual.reshape(M, O).astype(jnp.bfloat16)
        if (mp, npad) != (M, O):
            r = jnp.pad(r, ((0, mp - M), (0, npad - O)))
        out = bn_add_relu_pallas(y, r, scale, shift)
    return out[:M, :O].reshape(n, ho, wo, O)


@functools.partial(jax.jit, static_argnames=("kh", "kw", "stride", "pad",
                                             "K", "O", "relu", "defer"))
def _conv_bn_from_act(x, w2d, residual, *, kh, kw, stride, pad, K, O, relu, defer):
    """conv from a materialized NHWC activation."""
    patches, (n, ho, wo) = im2col(x, kh, kw, stride, pad)
    M = n * ho * wo
    mp = _pad_rows(M)
    kp = w2d.shape[0]
    if patches.shape != (mp, kp):
        patches = jnp.pad(patches, ((0, mp - M), (0, kp - K)))
    y, sp, qp = matmul_stats_pallas(patches, w2d)
    scale, shift = _bn_coeffs(sp, qp, M)
    if defer:
        return y, scale, shift
    return _finish(y, scale, shift, residual, M=M, O=O, n=n, ho=ho, wo=wo, relu=relu)


@functools.partial(jax.jit, static_argnames=("K", "O", "M", "n", "ho", "wo",
                                             "relu", "defer"))
def _conv_bn_from_pending(y_in, sc_in, sh_in, w2d, residual, *,
                          K, O, M, n, ho, wo, relu, defer):
    """1x1 stride-1 conv consuming a *deferred* activation: the previous BN+ReLU
    is fused into the matmul prologue (no HBM round trip for the activation)."""
    mp = _pad_rows(M)
    kp = w2d.shape[0]
    assert y_in.shape == (mp, kp), (y_in.shape, mp, kp)
    y, sp, qp = matmul_stats_pallas(y_in, w2d, a_scale=sc_in, a_shift=sh_in,
                                    m_valid=(M if M != mp else None))
    scale, shift = _bn_coeffs(sp, qp, M)
    if defer:
        return y, scale, shift
    return _finish(y, scale, shift, residual, M=M, O=O, n=n, ho=ho, wo=wo, relu=relu)


@functools.partial(jax.jit, static_argnames=("M", "C", "n", "h", "w"))
def _materialize(y, scale, shift, *, M, C, n, h, w):
    out = bn_act_pallas(y, scale, shift, True)
    return out[:M, :C].reshape(n, h, w, C)


class Pending(NamedTuple):
    """A conv output whose BatchNorm+ReLU is deferred into the next 1x1 conv's
    matmul prologue."""
    y: jax.Array          # (Mp, Cp) raw conv output, bf16, padded
    scale: jax.Array      # (1, Cp) f32 BN scale
    shift: jax.Array      # (1, Cp) f32 BN shift
    dims: tuple           # (N, H, W, C) logical NHWC dims


def _as_array(x):
    if isinstance(x, Pending):
        n, h, w, c = x.dims
        return _materialize(x.y, x.scale, x.shift, M=n * h * w, C=c, n=n, h=h, w=w)
    return x


def conv_bn(x, w2d, meta, *, stride, pad, relu, residual=None, defer=False):
    """conv (no bias) -> BatchNorm (batch stats, gamma=1, beta=0)
       -> optional residual add -> optional ReLU.
       `x` is an NHWC array or a Pending (deferred BN+ReLU) activation.
       `w2d` is the pre-transformed, pre-padded bf16 weight (K, O)."""
    kh, kw, K, O = meta
    if defer:
        assert relu and residual is None
    if isinstance(x, Pending) and kh == 1 and kw == 1 and stride == 1 and pad == 0:
        n, h, w, _ = x.dims
        ho, wo = h, w
        res = _conv_bn_from_pending(x.y, x.scale, x.shift, w2d, residual,
                                    K=K, O=O, M=n * ho * wo, n=n, ho=ho, wo=wo,
                                    relu=relu, defer=defer)
    else:
        xa = _as_array(x)
        n, h, w, _ = xa.shape
        ho = (h + 2 * pad - kh) // stride + 1
        wo = (w + 2 * pad - kw) // stride + 1
        res = _conv_bn_from_act(xa, w2d, residual, kh=kh, kw=kw, stride=stride,
                                pad=pad, K=K, O=O, relu=relu, defer=defer)
    if defer:
        yy, sc, sh = res
        return Pending(yy, sc, sh, (n, ho, wo, O))
    return res


# ----------------------------------------------------------------------------
# ResNet50 feature extractor
# ----------------------------------------------------------------------------
def kaiming_conv(key, o, i, kh, kw):
    # kaiming_normal_, mode='fan_out', nonlinearity='relu'
    fan_out = o * kh * kw
    std = math.sqrt(2.0 / fan_out)
    return jax.random.normal(key, (o, i, kh, kw), jnp.float32) * std


def init_resnet50_params(key):
    keys = iter(jax.random.split(key, 128))
    params = {'conv1': kaiming_conv(next(keys), 64, 3, 7, 7)}
    inplanes = 64
    layers = []
    for planes, blocks, stride in LAYER_CFG:
        blocks_p = []
        for b in range(blocks):
            s = stride if b == 0 else 1
            width = planes  # groups=1, base_width=64
            bp = {
                'conv1': kaiming_conv(next(keys), width, inplanes, 1, 1),
                'conv2': kaiming_conv(next(keys), width, width, 3, 3),
                'conv3': kaiming_conv(next(keys), planes * 4, width, 1, 1),
            }
            if b == 0 and (s != 1 or inplanes != planes * 4):
                bp['downsample'] = kaiming_conv(next(keys), planes * 4,
                                                inplanes, 1, 1)
            inplanes = planes * 4
            blocks_p.append(bp)
        layers.append(blocks_p)
    params['layers'] = layers
    return params


def _prepare_conv(w):
    """PyTorch (O,Cin,kh,kw) f32 -> padded bf16 (Kp, Np) matmul weight + meta.
    Done once at init so the forward never re-transposes / re-casts weights."""
    O, Cin, kh, kw = w.shape
    K = kh * kw * Cin
    kp, npad = _round_up(K, 128), _round_up(O, 128)
    w2d = jnp.transpose(w, (2, 3, 1, 0)).reshape(K, O).astype(jnp.bfloat16)
    if (kp, npad) != (K, O):
        w2d = jnp.pad(w2d, ((0, kp - K), (0, npad - O)))
    return w2d, (kh, kw, K, O)


def prepare_params(raw):
    weights, metas = {}, {}
    weights['conv1'], metas['conv1'] = _prepare_conv(raw['conv1'])
    wl, ml = [], []
    for blocks in raw['layers']:
        wb, mb = [], []
        for bp in blocks:
            wd, md = {}, {}
            for name, w in bp.items():
                wd[name], md[name] = _prepare_conv(w)
            wb.append(wd)
            mb.append(md)
        wl.append(wb)
        ml.append(mb)
    weights['layers'] = wl
    metas['layers'] = ml
    return weights, metas


def bottleneck_forward(x, bw, bm, stride):
    if 'downsample' in bw:
        identity = conv_bn(x, bw['downsample'], bm['downsample'],
                           stride=stride, pad=0, relu=False)
    else:
        identity = _as_array(x)
    out = conv_bn(x, bw['conv1'], bm['conv1'], stride=1, pad=0, relu=True)
    # BN2+ReLU deferred: fused into conv3's matmul prologue.
    out = conv_bn(out, bw['conv2'], bm['conv2'], stride=stride, pad=1,
                  relu=True, defer=True)
    # conv3 -> bn3 -> (+ identity) -> relu; residual add fused in the epilogue kernel
    out = conv_bn(out, bw['conv3'], bm['conv3'], stride=1, pad=0, relu=True,
                  residual=identity)
    return out


def resnet50_forward(weights, metas, x_nchw):
    # boundary: PyTorch NCHW -> internal NHWC
    x = jnp.transpose(x_nchw, (0, 2, 3, 1)).astype(jnp.float32)
    # Stem BN+ReLU deferred: fused into layer1 block0's conv1 / downsample prologues.
    x = conv_bn(x, weights['conv1'], metas['conv1'], stride=2, pad=3,
                relu=True, defer=True)
    # NOTE: the reference forward has no maxpool between conv1 and layer1.
    for (planes, blocks, stride), wl, ml in zip(LAYER_CFG, weights['layers'],
                                                metas['layers']):
        for b in range(blocks):
            x = bottleneck_forward(x, wl[b], ml[b], stride if b == 0 else 1)
    x = _as_array(x)
    # back to NCHW (f32) to match the PyTorch output convention
    return jnp.transpose(x, (0, 3, 1, 2)).astype(jnp.float32)


if __name__ == "__main__":
    key = jax.random.PRNGKey(0)
    pkey, xkey = jax.random.split(key)
    raw_params = init_resnet50_params(pkey)
    weights, metas = prepare_params(raw_params)      # one-time weight prep
    x = jax.random.normal(xkey, (2, 3, 16, 16), jnp.float32)

    out = resnet50_forward(weights, metas, x)
    out = jax.block_until_ready(out)

    # conv1 stride2: 16->8, layer2 stride2: 8->4, layer3/4 stride1 -> (2,2048,4,4)
    assert out.shape == (2, 2048, 4, 4), out.shape
    assert bool(jnp.all(jnp.isfinite(out)))
    print("KERNEL_OK")
</pallas_src>

<mosaic_0001>
module attributes {stable_mosaic.version = 11 : i64} {
  func.func @_matmul_stats_kernel(%arg0: i32, %arg1: i32, %arg2: i32, %arg3: memref<64x256xbf16, #tpu.memory_space<vmem>>, %arg4: memref<256x128xbf16, #tpu.memory_space<vmem>>, %arg5: memref<64x128xbf16, #tpu.memory_space<vmem>>, %arg6: memref<1x8x128xf32, #tpu.memory_space<vmem>>, %arg7: memref<1x8x128xf32, #tpu.memory_space<vmem>>, %arg8: memref<64x128xf32, #tpu.memory_space<vmem>>) attributes {dimension_semantics = [#tpu.dimension_semantics<parallel>, #tpu.dimension_semantics<parallel>, #tpu.dimension_semantics<arbitrary>], iteration_bounds = array<i64: 2, 1, 1>, scalar_prefetch = 0 : i64, scratch_operands = 1 : i64, tpu.core_type = #tpu.core_type<tc>, window_params = [{transform_indices = @transform_0, window_bounds = array<i64: 64, 256>}, {transform_indices = @transform_1, window_bounds = array<i64: 256, 128>}, {transform_indices = @transform_2, window_bounds = array<i64: 64, 128>}, {transform_indices = @transform_3, window_bounds = array<i64: 1, 8, 128>}, {transform_indices = @transform_4, window_bounds = array<i64: 1, 8, 128>}]} {
    %c0_i32 = arith.constant 0 : i32
    %0 = arith.cmpi eq, %arg2, %c0_i32 : i32
    %1 = arith.extui %0 : i1 to i32
    %c0_i32_0 = arith.constant 0 : i32
    %2 = arith.cmpi ne, %1, %c0_i32_0 : i32
    scf.if %2 {
      %cst_10 = arith.constant 0.000000e+00 : f32
      %12 = vector.broadcast %cst_10 : f32 to vector<64x128xf32>
      %c0_11 = arith.constant 0 : index
      %c0_12 = arith.constant 0 : index
      %13 = vector.load %arg8[%c0_11, %c0_12] : memref<64x128xf32, #tpu.memory_space<vmem>>, vector<64x128xf32>
      tpu.vector_store %arg8[%c0_11, %c0_12], %12 {strides = array<i32>} : memref<64x128xf32, #tpu.memory_space<vmem>>, vector<64x128xf32>,
    } else {
    }
    %c0 = arith.constant 0 : index
    %c0_1 = arith.constant 0 : index
    %3 = vector.load %arg3[%c0, %c0_1] : memref<64x256xbf16, #tpu.memory_space<vmem>>, vector<64x256xbf16>
    %c0_2 = arith.constant 0 : index
    %c0_3 = arith.constant 0 : index
    %4 = vector.load %arg8[%c0_2, %c0_3] : memref<64x128xf32, #tpu.memory_space<vmem>>, vector<64x128xf32>
    %c0_4 = arith.constant 0 : index
    %c0_5 = arith.constant 0 : index
    %5 = vector.load %arg4[%c0_4, %c0_5] : memref<256x128xbf16, #tpu.memory_space<vmem>>, vector<256x128xbf16>
    %cst = arith.constant dense<0.000000e+00> : vector<64x128xf32>
    %6 = tpu.matmul %3, %5, %cst {dimension_numbers = #tpu.dot_dimension_numbers<[1], [0], [0], [1], [0, 0, 1, 1], [], []>} : vector<64x256xbf16>, vector<256x128xbf16>, vector<64x128xf32> -> vector<64x128xf32>
    %7 = arith.addf %4, %6 : vector<64x128xf32>
    %c0_6 = arith.constant 0 : index
    %c0_7 = arith.constant 0 : index
    %8 = vector.load %arg8[%c0_6, %c0_7] : memref<64x128xf32, #tpu.memory_space<vmem>>, vector<64x128xf32>
    tpu.vector_store %arg8[%c0_6, %c0_7], %7 {strides = array<i32>} : memref<64x128xf32, #tpu.memory_space<vmem>>, vector<64x128xf32>,
    %c0_i32_8 = arith.constant 0 : i32
    %9 = arith.cmpi eq, %arg2, %c0_i32_8 : i32
    %10 = arith.extui %9 : i1 to i32
    %c0_i32_9 = arith.constant 0 : i32
    %11 = arith.cmpi ne, %10, %c0_i32_9 : i32
    scf.if %11 {
      %c0_10 = arith.constant 0 : index
      %c0_11 = arith.constant 0 : index
      %12 = vector.load %arg8[%c0_10, %c0_11] : memref<64x128xf32, #tpu.memory_space<vmem>>, vector<64x128xf32>
      %13 = arith.truncf %12 : vector<64x128xf32> to vector<64x128xbf16>
      %c0_12 = arith.constant 0 : index
      %c0_13 = arith.constant 0 : index
      %14 = vector.load %arg5[%c0_12, %c0_13] : memref<64x128xbf16, #tpu.memory_space<vmem>>, vector<64x128xbf16>
      tpu.vector_store %arg5[%c0_12, %c0_13], %13 {strides = array<i32>} : memref<64x128xbf16, #tpu.memory_space<vmem>>, vector<64x128xbf16>,
      %cst_14 = arith.constant dense<0.000000e+00> : vector<128xf32>
      %15 = vector.multi_reduction <add>, %12, %cst_14 [0] : vector<64x128xf32> to vector<128xf32>
      %16 = vector.shape_cast %15 : vector<128xf32> to vector<1x128xf32>
      %17 = arith.mulf %12, %12 : vector<64x128xf32>
      %cst_15 = arith.constant dense<0.000000e+00> : vector<128xf32>
      %18 = vector.multi_reduction <add>, %17, %cst_15 [0] : vector<64x128xf32> to vector<128xf32>
      %19 = vector.shape_cast %18 : vector<128xf32> to vector<1x128xf32>
      %20 = vector.shape_cast %16 : vector<1x128xf32> to vector<1x1x128xf32>
      %21 = vector.broadcast %20 : vector<1x1x128xf32> to vector<1x8x128xf32>
      %c0_16 = arith.constant 0 : index
      %c0_17 = arith.constant 0 : index
      %c0_18 = arith.constant 0 : index
      %22 = vector.load %arg6[%c0_16, %c0_17, %c0_18] : memref<1x8x128xf32, #tpu.memory_space<vmem>>, vector<1x8x128xf32>
      tpu.vector_store %arg6[%c0_16, %c0_17, %c0_18], %21 {strides = array<i32>} : memref<1x8x128xf32, #tpu.memory_space<vmem>>, vector<1x8x128xf32>,
      %23 = vector.shape_cast %19 : vector<1x128xf32> to vector<1x1x128xf32>
      %24 = vector.broadcast %23 : vector<1x1x128xf32> to vector<1x8x128xf32>
      %c0_19 = arith.constant 0 : index
      %c0_20 = arith.constant 0 : index
      %c0_21 = arith.constant 0 : index
      %25 = vector.load %arg7[%c0_19, %c0_20, %c0_21] : memref<1x8x128xf32, #tpu.memory_space<vmem>>, vector<1x8x128xf32>
      tpu.vector_store %arg7[%c0_19, %c0_20, %c0_21], %24 {strides = array<i32>} : memref<1x8x128xf32, #tpu.memory_space<vmem>>, vector<1x8x128xf32>,
    } else {
    }
    return
  }
  func.func @transform_0(%arg0: i32, %arg1: i32, %arg2: i32) -> (i32, i32) {
    %c0_i32 = arith.constant 0 : i32
    return %arg0, %arg2 : i32, i32
  }
  func.func @transform_1(%arg0: i32, %arg1: i32, %arg2: i32) -> (i32, i32) {
    %c0_i32 = arith.constant 0 : i32
    return %arg2, %arg1 : i32, i32
  }
  func.func @transform_2(%arg0: i32, %arg1: i32, %arg2: i32) -> (i32, i32) {
    %c0_i32 = arith.constant 0 : i32
    return %arg0, %arg1 : i32, i32
  }
  func.func @transform_3(%arg0: i32, %arg1: i32, %arg2: i32) -> (i32, i32, i32) {
    %c0_i32 = arith.constant 0 : i32
    %c0_i32_0 = arith.constant 0 : i32
    return %arg0, %c0_i32, %arg1 : i32, i32, i32
  }
  func.func @transform_4(%arg0: i32, %arg1: i32, %arg2: i32) -> (i32, i32, i32) {
    %c0_i32 = arith.constant 0 : i32
    %c0_i32_0 = arith.constant 0 : i32
    return %arg0, %c0_i32, %arg1 : i32, i32, i32
  }
}

</mosaic_0001>

<bundles_post_ra>
// kernel: _conv_bn_from_act.1
= control target key start
LH: loop header
LB: loop body
LE: loop exit
PB: predicated region body
PF: predicated region fallthrough
CT: control target
= control target key end

     0   :  { %10 = vsyncpa [#allocation4], 0  ;;  %s1392_s0 = inlined_call_operand.vmem [shape: bf16[128,256], index: 0, kind: input, shape index: {}]   ;;  %s1393_s1 = inlined_call_operand.vmem [shape: bf16[256,128], index: 1, kind: input, shape index: {}]   ;;  %s1394_s2 = inlined_call_operand.hbm [shape: bf16[128,128], index: 2, kind: output, shape index: {0}]   ;;  %s1395_s3 = inlined_call_operand.vmem [shape: f32[2,8,128], index: 3, kind: output, shape index: {1}]   ;;  %s1396_s4 = inlined_call_operand.vmem [shape: f32[2,8,128], index: 4, kind: output, shape index: {2}]  }
   0x1   :  { %12 = vsyncpa [#allocation4 + $0x1], 0  ;;  %s1201_s15 = smov 0   ;;  %s1203_s16 = smov 0  }
   0x2   :  { %s1205_s17 = smov 0   ;;  %s1207_s18 = smov 0  }
   0x3   :  { %s1209_s19 = smov 0   ;;  %s1211_s20 = smov 0  }
   0x4 LB: > { %s870_s21 = sadd.s32 4294967295, %s1171_s20   ;;  %s871_s22 = sadd.s32 4294967294, %s1171_s20   ;;  %s1171_s20 = sphi %s1211_s20, %s18_s20   ;;  %s1167_s19 = sphi %s1209_s19, %s1403_s19   ;;  %s1163_s18 = sphi %s1207_s18, %s1402_s18   ;;  %s1159_s17 = sphi %s1205_s17, %s1401_s17   ;;  %s1155_s16 = sphi %s1203_s16, %s1400_s16   ;;  %s1151_s15 = sphi %s1201_s15, %s1399_s15  }
   0x5   : > { %s37_s23 = sadd.s32 1, %s1167_s19  ;;  %s102_s24 = sadd.s32 1, %s1159_s17 }
   0x6   : > { %p39_p0 = scmp.ge.s32.totalorder %s37_s23, 2  ;;  %p112_p1 = scmp.ne.s32.totalorder %s1159_s17, %s1155_s16 }
   0x7   : > { %p113_p2 = scmp.eq.s32.totalorder %s870_s21, 1  ;;  %p118_p3 = scmp.ne.s32.totalorder %s1155_s16, %s1151_s15 }
   0x8   : > { %s1405_s23 = smov (%p39_p0, %s37_s23), 0  ;;  %p119_p5 = scmp.eq.s32.totalorder %s871_s22, 1 }
   0x9   : > { %p1241_p4 = por %p113_p2, %p112_p1  ;;  %s97_s26 = ssub.s32 %s1167_s19, %s1405_s23 }
   0xa   : > { %p875_p6 = scmp.ge.s32.totalorder %s1171_s20, 1  ;;  %p100_p7 = scmp.eq.s32.totalorder %s97_s26, 0 }
   0xb   : > { %p1248_p8 = por %p119_p5, %p118_p3  ;;  %p220_p9 = scmp.lt.s32.totalorder %s1171_s20, 3 }
   0xc   : > { %s1254_s28 = scalar_select %p100_p7, %s1159_s17, %s102_s24  }
   0xd   : > { %p221_p10 = pnand %p875_p6, %p220_p9 }
   0xe   : > { %v1065_v0 = vld [vmem:[%s1393_s1 + $0x40] sm:$0xff] (!%p221_p10)   ;;  %s877_s5 = sshll.u32 (!%p221_p10), %s1163_s18, 3  ;;  %v1067_v2 = vld [vmem:[%s1393_s1 + $0x48] sm:$0xff] (!%p221_p10)   ;;  %v1069_v4 = vld [vmem:[%s1393_s1 + $0x50] sm:$0xff] (!%p221_p10)   ;;  %s252_s9 = sand.u32 (!%p221_p10), 1, %s1155_s16  }
   0xf   : > { %224 = sbr.rel (%p221_p10) target bundleno = 308 (0x134), region = 28  ;;  %v1066_v1 = vld [vmem:[%s1393_s1] sm:$0xff] (!%p221_p10)   ;;  %952 = vmatprep.subr.bf16.mxu0 (!%p221_p10), %v1065_v0  ;;  %992 = vmatprep.subr.bf16.mxu1 (!%p221_p10), %v1065_v0  ;;  %v1068_v3 = vld [vmem:[%s1393_s1 + $0x8] sm:$0xff] (!%p221_p10)   ;;  %p275_p11 = scmp.lt.s32.totalorder (!%p221_p10), %s877_s5, 15  ;;  %v1070_v5 = vld [vmem:[%s1393_s1 + $0x10] sm:$0xff] (!%p221_p10)  }
  0x10   : > { %953 = vmatpush3.bf16.msra.mxu0 (!%p221_p10), %v1066_v1  ;;  %1000 = vmatpush3.bf16.msra.mxu1 (!%p221_p10), %v1066_v1  ;;  %v1071_v6 = vld [vmem:[%s1393_s1 + $0x58] sm:$0xff] (!%p221_p10)   ;;  %v1073_v8 = vld [vmem:[%s1393_s1 + $0x60] sm:$0xff] (!%p221_p10)   ;;  %v1075_v10 = vld [vmem:[%s1393_s1 + $0x68] sm:$0xff] (!%p221_p10)   ;;  %s876_s11 = sshll.u32 (!%p221_p10), %s252_s9, 5  ;;  %s1338_s22 = scalar_lea.sflag (!%p221_p10), [#allocation4], %s252_s9 }
  0x11   : > { %954 = vmatprep.subr.bf16.mxu0 (!%p221_p10), %v1067_v2  ;;  %993 = vmatprep.subr.bf16.mxu1 (!%p221_p10), %v1067_v2  ;;  %v1072_v7 = vld [vmem:[%s1393_s1 + $0x18] sm:$0xff] (!%p221_p10)   ;;  %v1074_v9 = vld [vmem:[%s1393_s1 + $0x20] sm:$0xff] (!%p221_p10)   ;;  %v1076_v13 = vld [vmem:[%s1393_s1 + $0x28] sm:$0xff] (!%p221_p10)   ;;  %s1173_s26 = smov (!%p221_p10), [#allocation3]  }
  0x12   : > { %v1077_v14 = vld [vmem:[%s1393_s1 + $0x70] sm:$0xff] (!%p221_p10)   ;;  %v1079_v16 = vld [vmem:[%s1393_s1 + $0x78] sm:$0xff] (!%p221_p10)   ;;  %s1097_s29 = sshll.u32 (!%p221_p10), %s1173_s26, 4  ;;  %s1098_s29 = int_to_ptr.vmem [resolvable:$false] %s1097_s29 }
  0x13   : > { %v1078_v15 = vld [vmem:[%s1393_s1 + $0x30] sm:$0xff] (!%p221_p10)   ;;  %v1080_v17 = vld [vmem:[%s1393_s1 + $0x38] sm:$0xff] (!%p221_p10)  }
  0x14   : > { %955 = vmatpush3.bf16.msra.mxu0 (!%p221_p10), %v1068_v3  ;;  %1001 = vmatpush3.bf16.msra.mxu1 (!%p221_p10), %v1068_v3 }
  0x15   : > { %956 = vmatprep.subr.bf16.mxu0 (!%p221_p10), %v1069_v4  ;;  %994 = vmatprep.subr.bf16.mxu1 (!%p221_p10), %v1069_v4 }
  0x16   : > { %s1407_s5 = smov (!%p275_p11, %s877_s5), 15 }
  0x17   : > { %s919_s30 = sshll.u32 %s1407_s5, 3  ;;  %s928_s5 = sshll.u32 %s1163_s18, 9 }
  0x18   : > { %957 = vmatpush3.bf16.msra.mxu0 %v1070_v5  ;;  %1002 = vmatpush3.bf16.msra.mxu1 %v1070_v5  ;;  %s1287_s10 = scalar_lea.vmem %s1392_s0, %s919_s30  ;;  %s1330_s21 = scalar_lea.hbm %s1394_s2, %s928_s5 }
  0x19   : > { %958 = vmatprep.subr.bf16.mxu0 %v1071_v6  ;;  %995 = vmatprep.subr.bf16.mxu1 %v1071_v6  ;;  %v1083_v11 = vld [vmem:[%s1287_s10 + $0x4] ss:$8 sps:$4 sm:$0xff]   ;;  %v1081_v18 = vld [vmem:[%s1287_s10] ss:$8 sps:$4 sm:$0xff]   ;;  %v1087_v20 = vld [vmem:[%s1287_s10 + $0x14] ss:$8 sps:$4 sm:$0xff]  }
  0x1a   : > { %v1086_v12 = vld [vmem:[%s1287_s10 + $0x24] ss:$8 sps:$4 sm:$0xff]   ;;  %538 = vmatprep.mubr.bf16.mxu0 %v1083_v11  ;;  %v1084_v19 = vld [vmem:[%s1287_s10 + $0x20] ss:$8 sps:$4 sm:$0xff]   ;;  %v1090_v21 = vld [vmem:[%s1287_s10 + $0x34] ss:$8 sps:$4 sm:$0xff]  }
  0x1b   : > { %554 = vmatprep.mubr.bf16.mxu1 %v1086_v12  ;;  %v1089_v22 = vld [vmem:[%s1287_s10 + $0x10] ss:$8 sps:$4 sm:$0xff]   ;;  %s1099_s30 = scalar_lea.vmem %s1098_s29, 1024 }
  0x1c   : > { %959 = vmatpush3.bf16.msra.mxu0 %v1072_v7  ;;  %1003 = vmatpush3.bf16.msra.mxu1 %v1072_v7  ;;  %v1092_v23 = vld [vmem:[%s1287_s10 + $0x30] ss:$8 sps:$4 sm:$0xff]   ;;  %s1321_s10 = scalar_lea.vmem [#allocation3], %s876_s11 }
  0x1d   : > { %960 = vmatprep.subr.bf16.mxu0 %v1073_v8  ;;  %996 = vmatprep.subr.bf16.mxu1 %v1073_v8  ;;  %s703_s12 = sshll.u32 %s1321_s10, 4  ;;  %s1332_s12 = int_to_ptr.vmem [resolvable:$true] %s703_s12 }
  0x1e   : > { %s1093_s24 = scalar_lea.vmem %s1332_s12, 512  ;;  %p1100_p1 = scmp.lt.s32.totalorder %s1332_s12, %s1098_s29 }
  0x1f   : > { %p1094_p12 = scmp.ne.s32.totalorder %s1332_s12, %s1093_s24  ;;  %p1101_p2 = scmp.lt.s32.totalorder %s1099_s30, %s1093_s24 }
  0x20   : > { %961 = vmatpush3.bf16.msra.mxu0 %v1074_v9  ;;  %1004 = vmatpush3.bf16.msra.mxu1 %v1074_v9 }
  0x21   : > { %962 = vmatprep.subr.bf16.mxu0 %v1075_v10  ;;  %997 = vmatprep.subr.bf16.mxu1 %v1075_v10  ;;  %p1095_p13 = pnand %p1094_p12, %p1241_p4  ;;  %p1102_p3 = por %p1101_p2, %p1100_p1 }
  0x23   : > { %p1096_p0 = pneg %p1095_p13 }
  0x24   : > { %963 = vmatpush3.bf16.msra.mxu0 %v1076_v13  ;;  %1005 = vmatpush3.bf16.msra.mxu1 %v1076_v13 }
  0x25   : > { %964 = vmatprep.subr.bf16.mxu0 %v1077_v14  ;;  %998 = vmatprep.subr.bf16.mxu1 %v1077_v14  ;;  %p1103_p5 = pnand %p1102_p3, %p1096_p0 }
  0x28   : > { %965 = vmatpush3.bf16.msra.mxu0 %v1078_v15  ;;  %1006 = vmatpush3.bf16.msra.mxu1 %v1078_v15 }
  0x29   : > { %966 = vmatprep.subr.bf16.mxu0 %v1079_v16  ;;  %999 = vmatprep.subr.bf16.mxu1 %v1079_v16 }
  0x2c   : > { %967 = vmatpush3.bf16.msra.mxu0 %v1080_v17  ;;  %1007 = vmatpush3.bf16.msra.mxu1 %v1080_v17 }
  0x2f   : > { %539 = vmatmul.mubr.bf16.vlgmr.msra.gmra.mrb[0].mxu0 %v1081_v18  ;;  %555 = vmatmul.mubr.bf16.vlgmr.msra.gmra.mrb[0].mxu1 %v1084_v19 }
  0x30   : > { %546 = vmatprep.mubr.bf16.mxu0 %v1087_v20  ;;  %562 = vmatprep.mubr.bf16.mxu1 %v1090_v21 }
  0x37   : > { %547 = vmatmul.mubr.bf16.gmra.mrb[4].mxu0 %v1089_v22  ;;  %563 = vmatmul.mubr.bf16.gmra.mrb[4].mxu1 %v1092_v23 }
 0x102   : > { %v968_v24 = vpop.f32.mrb[0].mxu0  ;;  %v980_v25 = vpop.f32.mrb[0].mxu1 }
 0x103   : > { %v969_v26 = vpop.f32.mrb[1].mxu0  ;;  %v981_v27 = vpop.f32.mrb[1].mxu1 }
 0x104   : > { %v970_v28 = vadd.f32 %v969_v26, %v968_v24  ;;  %v971_v29 = vpop.f32.mrb[2].mxu0  ;;  %v982_v30 = vadd.f32 %v981_v27, %v980_v25  ;;  %v983_v31 = vpop.f32.mrb[2].mxu1 }
 0x105   : > { %v972_v32 = vpop.f32.mrb[3].mxu0  ;;  %v984_v33 = vpop.f32.mrb[3].mxu1 }
 0x106   : > { %v973_v34 = vadd.f32 %v972_v32, %v971_v29  ;;  %v985_v35 = vadd.f32 %v984_v33, %v983_v31  ;;  %v651_v36 = vmul.f32 %v970_v28, %v970_v28  ;;  %v655_v61 = vmul.f32 %v982_v30, %v982_v30 }
 0x108   : > { %v932_v37 = vpack.c.bf16 %v973_v34, %v970_v28  ;;  %v638_v38 = vadd.f32 %v973_v34, %v970_v28  ;;  %v652_v39 = vmul.f32 %v973_v34, %v973_v34  ;;  %v942_v40 = vpack.c.bf16 %v985_v35, %v982_v30 }
 0x109   : > { %v656_v0 = vmul.f32 %v985_v35, %v985_v35 }
 0x10a   : > { %933 = vst [vmem:[%s1321_s10] sm:$0xff] %v932_v37   ;;  %v659_v41 = vadd.f32 %v652_v39, %v651_v36  ;;  %v974_v42 = vpop.f32.mrb[4].mxu0  ;;  %950 = vst [vmem:[%s1321_s10 + $0x10] sm:$0xff] %v942_v40   ;;  %v986_v43 = vpop.f32.mrb[4].mxu1 }
 0x10b   : > { %v975_v44 = vpop.f32.mrb[5].mxu0  ;;  %v987_v45 = vpop.f32.mrb[5].mxu1 }
 0x10c   : > { %v976_v46 = vadd.f32 %v975_v44, %v974_v42  ;;  %v977_v47 = vpop.f32.mrb[6].mxu0  ;;  %v988_v48 = vadd.f32 %v987_v45, %v986_v43  ;;  %v989_v49 = vpop.f32.mrb[6].mxu1 }
 0x10d   : > { %v978_v50 = vpop.f32.mrb[7].mxu0  ;;  %v990_v51 = vpop.f32.mrb[7].mxu1 }
 0x10e   : > { %v639_v52 = vadd.f32 %v976_v46, %v638_v38  ;;  %v653_v53 = vmul.f32 %v976_v46, %v976_v46  ;;  %v979_v54 = vadd.f32 %v978_v50, %v977_v47  ;;  %v991_v55 = vadd.f32 %v990_v51, %v989_v49 }
 0x10f   : > { %v657_v3 = vmul.f32 %v988_v48, %v988_v48 }
 0x110   : > { %v660_v56 = vadd.f32 %v659_v41, %v653_v53  ;;  %v937_v57 = vpack.c.bf16 %v979_v54, %v976_v46  ;;  %v640_v58 = vadd.f32 %v979_v54, %v639_v52  ;;  %v654_v59 = vmul.f32 %v979_v54, %v979_v54 }
 0x111   : > { %v947_v60 = vpack.c.bf16 %v991_v55, %v988_v48 }
 0x112   : > { %949 = vst [vmem:[%s1321_s10 + $0x8] sm:$0xff] %v937_v57   ;;  %v641_v62 = vadd.f32 %v982_v30, %v640_v58  ;;  %v661_v63 = vadd.f32 %v660_v56, %v654_v59 }
 0x113   : > { %951 = vst [vmem:[%s1321_s10 + $0x18] sm:$0xff] %v947_v60  }
 0x114   : > { %v662_v1 = vadd.f32 %v661_v63, %v655_v61  ;;  %v642_v2 = vadd.f32 %v985_v35, %v641_v62 }
 0x115   : > { %1106 = shalt.err (!%p1103_p5)
}
 0x116   : > { %s1107_s6 = scalar_lea.hbm %s1330_s21, 512  ;;  %s1111_s9 = scalar_lea.hbm %s1394_s2, 1024 }
 0x117   : > { %p1108_p6 = scmp.ne.s32.totalorder %s1330_s21, %s1107_s6  ;;  %p1112_p10 = scmp.lt.u32.totalorder %s1330_s21, %s1394_s2 }
 0x118   : > { %p1113_p11 = scmp.lt.u32.totalorder %s1111_s9, %s1107_s6  ;;  %p1115_p13 = scmp.lt.u32.totalorder %s1107_s6, %s1330_s21 }
 0x119   : > { %p1109_p7 = pnand %p1108_p6, %p1241_p4 }
 0x11a   : > { %p1114_p12 = por %p1113_p11, %p1112_p10 }
 0x11b   : > { %p1110_p9 = pneg %p1109_p7 }
 0x11c   : > { %p1116_p0 = por %p1115_p13, %p1114_p12 }
 0x11e   : > { %p1117_p1 = pnand %p1116_p0, %p1110_p9 }
 0x120   : > { %1120 = shalt.err (!%p1117_p1)
}
 0x121   : > { %s1174_s5 = smov 64   ;;  %s1175_s13 = smov 4   ;;  %v643_v4 = vadd.f32 %v988_v48, %v642_v2  ;;  %v663_v5 = vadd.f32 %v662_v1, %v656_v0  ;;  %v658_v8 = vmul.f32 %v991_v55, %v991_v55 }
 0x122   : > { %1008 = dma.vmem_to_hbm [thread:$0]  (%p1241_p4), %s1332_s12, 512, %s1330_s21, %s1338_s22, %s1174_s5, %s1174_s5, %s1175_s13  }
 0x123   : > { %v664_v6 = vadd.f32 %v663_v5, %v657_v3  ;;  %p295_p2 = scmp.lt.s32.totalorder %s1163_s18, 1  ;;  %v644_v7 = vadd.f32 %v991_v55, %v643_v4 }
 0x125   : > { %v645_v9 = vrot.slane %v644_v7, 4  ;;  %v665_v10 = vadd.f32 %v664_v6, %v658_v8  ;;  %s1409_s18 = smov (!%p295_p2, %s1163_s18), 1 }
 0x126   : > { %s880_s14 = sshll.u32 %s1409_s18, 3 }
 0x127   : > { %v646_v11 = vadd.f32 %v645_v9, %v644_v7  ;;  %v666_v12 = vrot.slane %v665_v10, 4  ;;  %s301_s21 = scalar_lea.vmem %s1395_s3, %s880_s14  ;;  %s308_s26 = scalar_lea.vmem %s1396_s4, %s880_s14 }
 0x129   : > { %v647_v13 = vrot.slane %v646_v11, 2  ;;  %v667_v14 = vadd.f32 %v666_v12, %v665_v10 }
 0x12b   : > { %v648_v15 = vadd.f32 %v647_v13, %v646_v11  ;;  %v668_v16 = vrot.slane %v667_v14, 2 }
 0x12d   : > { %v649_v17 = vrot.slane %v648_v15, 1  ;;  %v669_v18 = vadd.f32 %v668_v16, %v667_v14 }
 0x12f   : > { %v650_v19 = vadd.f32 %v649_v17, %v648_v15  ;;  %v670_v20 = vrot.slane %v669_v18, 1 }
 0x131   : > { %v671_v21 = vadd.f32 %v670_v20, %v669_v18  ;;  %672 = vst [vmem:[%s301_s21] sm:$0xff] %v650_v19 }
 0x133   : > { %673 = vst [vmem:[%s308_s26] sm:$0xff] %v671_v21 }
 0x134 PF: > { %p1014_p4 = scmp.ge.s32.totalorder %s1171_s20, 2  ;;  %s724_s18 = sand.u32 1, %s1151_s15  }
 0x135   : > { %s725_s29 = scalar_lea.sflag [#allocation4], %s724_s18 }
 0x136   : > { %p1011_p3 = pnand %p1014_p4, %p1248_p8 }
 0x138   : > { %1146 = dma.done.wait (!%p1011_p3), %s725_s29, 512  }
 0x139   : > { %1148 = vsyncadd (!%p1011_p3), %s725_s29, 4294966784  ;;  %s18_s20 = sadd.s32 1, %s1171_s20   ;;  %s1399_s15 = smov %s1155_s16 }
 0x13a   : > { %p15_p5 = scmp.ge.s32.totalorder %s18_s20, 4   ;;  %s1400_s16 = smov %s1159_s17 }
 0x13b   : > { %s1401_s17 = smov %s1254_s28  ;;  %s1402_s18 = smov %s1167_s19 }
 0x13c   : > { %s1403_s19 = smov %s1405_s23  ;;  %17 = sbr.rel (!%p15_p5) target bundleno = 4 (0x4), region = 98 }
 0x143   :  { %750 = vsyncpa [#allocation4], 1 }
 0x144   :  { %752 = vsyncpa [#allocation4 + $0x1], 1 }

</bundles_post_ra>
